<compile_context>
chip_gen: v6e
topology: v6e:2x2x1
jax: 0.10.0
libtpu: 0.0.40
codegen_flags: <defaults>
</compile_context>

<pallas_src>
import functools

import jax
import jax.numpy as jnp
from jax import lax
from jax.experimental import pallas as pl
from jax.experimental.pallas import tpu as pltpu


# -----------------------------------------------------------------------------
# Global kernel config (generation aware)
# -----------------------------------------------------------------------------
ACT_DTYPE = jnp.bfloat16      # inter-kernel activation dtype
PARAM_DTYPE = jnp.bfloat16    # matmul weights; MXU ingests bf16 natively
LRELU_SLOPE = 0.02            # RVT / peract LRELU_SLOPE


def _detect_vmem_limit():
    # ~96 MiB budget on 128-MiB parts (v5e/v6e); ~48 MiB on v7x's 64-MiB VMEM.
    try:
        cap = int(pltpu.get_tpu_info().vmem_capacity_bytes)
    except Exception:
        cap = 64 * 1024 * 1024   # conservative fallback
    return max(32 * 1024 * 1024, min((cap * 3) // 4, 96 * 1024 * 1024))


VMEM_LIMIT = _detect_vmem_limit()
BIG_VMEM = VMEM_LIMIT >= 64 * 1024 * 1024
TILE_TARGET_BYTES = (4 if BIG_VMEM else 2) * 1024 * 1024   # per-step DMA target
MAX_ROW_TILE = 8192 if BIG_VMEM else 4096                  # multiple of 8
ATTN_Q_TILE = 512 if BIG_VMEM else 256                     # q-tile for attention
FF_ROW_TILE = 512                                          # token tile for the FF block


def _cparams(n_axes):
    return pltpu.CompilerParams(
        dimension_semantics=("parallel",) * n_axes,
        vmem_limit_bytes=int(VMEM_LIMIT),
    )


def _row_tile(m, bytes_per_row):
    """Byte-budget-aware row tile (multiple of 8), full block when small."""
    t = TILE_TARGET_BYTES // max(int(bytes_per_row), 1)
    t = min(t, MAX_ROW_TILE)
    t -= t % 8
    t = max(t, 8)
    if m <= t:
        return m
    return t


def _apply_act(y, act):
    # y is always f32 here (VPU elementwise in f32 -> also correct on v5e).
    if act == "lrelu":
        return jnp.where(y >= 0.0, y, LRELU_SLOPE * y)
    if act == "relu":
        return jnp.maximum(y, 0.0)
    if act == "gelu":
        # TODO(synk): PyTorch nn.GELU() default is exact erf; tanh approx used here.
        return jax.nn.gelu(y, approximate=True)
    return y


# -----------------------------------------------------------------------------
# Pallas kernels
# -----------------------------------------------------------------------------
def _linear_kernel(x_ref, w_ref, b_ref, o_ref, *, act):
    y = jnp.dot(x_ref[...], w_ref[...], preferred_element_type=jnp.float32)
    y = y + b_ref[...]
    y = _apply_act(y, act)
    o_ref[...] = y.astype(o_ref.dtype)


def pallas_linear(x, w, b, act="none", out_dtype=ACT_DTYPE):
    """y = act(x @ w + b), row-tiled over M with the weight resident in VMEM."""
    M, K = x.shape
    N = w.shape[1]
    tm = _row_tile(M, 2 * (K + N))
    return pl.pallas_call(
        functools.partial(_linear_kernel, act=act),
        grid=(pl.cdiv(M, tm),),
        in_specs=[
            pl.BlockSpec((tm, K), lambda i: (i, 0)),
            pl.BlockSpec((K, N), lambda i: (0, 0)),   # weight stays resident
            pl.BlockSpec((1, N), lambda i: (0, 0)),
        ],
        out_specs=pl.BlockSpec((tm, N), lambda i: (i, 0)),
        out_shape=jax.ShapeDtypeStruct((M, N), out_dtype),
        compiler_params=_cparams(1),
    )(x, w, b)


def _preproc_patchify_kernel(x_ref, iw_ref, ib_ref, pw_ref, pb_ref, o_ref, acc_ref,
                             *, p2, im, act):
    # x_ref: (p2, tm, C) position-major raw-image patches for a tile of tokens.
    # For each kernel position q: 1x1 conv + act, then accumulate into the patch matmul
    # using the corresponding (im, im) slab of patch_w.  No repacking / relayout needed.
    acc_ref[...] = jnp.zeros_like(acc_ref)

    def body(q, _):
        xq = x_ref[q]                                                 # (tm, C)
        d = jnp.dot(xq, iw_ref[...], preferred_element_type=jnp.float32) + ib_ref[...]
        d = _apply_act(d, act)
        start = pl.multiple_of(q * im, im)
        wq = pw_ref[pl.ds(start, im), :]                              # (im, im)
        acc_ref[...] += jnp.dot(d.astype(wq.dtype), wq,
                                preferred_element_type=jnp.float32)
        return 0

    lax.fori_loop(0, p2, body, 0)
    y = _apply_act(acc_ref[...] + pb_ref[...], act)
    o_ref[...] = y.astype(o_ref.dtype)


def pallas_preproc_patchify(x_pm, inp_w, inp_b, patch_w, patch_b, act,
                            out_dtype=ACT_DTYPE):
    """Fused input_preprocess (1x1 conv + act) + patchify (kxk stride-k conv + act).

    x_pm: (p*p, M, C) position-major im2col of the RAW image (M = bs*V*npat*npat)."""
    P2, M, C = x_pm.shape
    im = inp_w.shape[1]
    tm = _row_tile(M, 2 * (P2 * C + im))
    return pl.pallas_call(
        functools.partial(_preproc_patchify_kernel, p2=P2, im=im, act=act),
        grid=(pl.cdiv(M, tm),),
        in_specs=[
            pl.BlockSpec((P2, tm, C), lambda i: (0, i, 0)),
            pl.BlockSpec((C, im), lambda i: (0, 0)),
            pl.BlockSpec((1, im), lambda i: (0, 0)),
            pl.BlockSpec((P2 * im, im), lambda i: (0, 0)),   # patch weight resident
            pl.BlockSpec((1, im), lambda i: (0, 0)),
        ],
        out_specs=pl.BlockSpec((tm, im), lambda i: (i, 0)),
        out_shape=jax.ShapeDtypeStruct((M, im), out_dtype),
        scratch_shapes=[pltpu.VMEM((tm, im), jnp.float32)],
        compiler_params=_cparams(1),
    )(x_pm, inp_w, inp_b, patch_w, patch_b)


def _ln_qkv_kernel(x_ref, g_ref, bt_ref, qw_ref, qb_ref, kvw_ref, kvb_ref,
                   q_ref, kv_ref):
    x = x_ref[...].astype(jnp.float32)
    mu = jnp.mean(x, axis=-1, keepdims=True)
    var = jnp.mean((x - mu) ** 2, axis=-1, keepdims=True)
    h = ((x - mu) * lax.rsqrt(var + 1e-5) * g_ref[...] + bt_ref[...]).astype(qw_ref.dtype)
    q = jnp.dot(h, qw_ref[...], preferred_element_type=jnp.float32) + qb_ref[...]
    kv = jnp.dot(h, kvw_ref[...], preferred_element_type=jnp.float32) + kvb_ref[...]
    q_ref[...] = q.astype(q_ref.dtype)
    kv_ref[...] = kv.astype(kv_ref.dtype)


def pallas_ln_qkv(x, gamma, beta, qw, qb, kvw, kvb, out_dtype=ACT_DTYPE):
    """LayerNorm (f32 stats) fused with the q and kv projections (two outputs)."""
    M, K = x.shape
    Nq = qw.shape[1]
    Nkv = kvw.shape[1]
    tm = _row_tile(M, 2 * (K + Nq + Nkv) + 4 * K)
    return pl.pallas_call(
        _ln_qkv_kernel,
        grid=(pl.cdiv(M, tm),),
        in_specs=[
            pl.BlockSpec((tm, K), lambda i: (i, 0)),
            pl.BlockSpec((1, K), lambda i: (0, 0)),
            pl.BlockSpec((1, K), lambda i: (0, 0)),
            pl.BlockSpec((K, Nq), lambda i: (0, 0)),
            pl.BlockSpec((1, Nq), lambda i: (0, 0)),
            pl.BlockSpec((K, Nkv), lambda i: (0, 0)),
            pl.BlockSpec((1, Nkv), lambda i: (0, 0)),
        ],
        out_specs=(
            pl.BlockSpec((tm, Nq), lambda i: (i, 0)),
            pl.BlockSpec((tm, Nkv), lambda i: (i, 0)),
        ),
        out_shape=(
            jax.ShapeDtypeStruct((M, Nq), out_dtype),
            jax.ShapeDtypeStruct((M, Nkv), out_dtype),
        ),
        compiler_params=_cparams(1),
    )(x, gamma, beta, qw, qb, kvw, kvb)


def _attn_kernel(q_ref, kv_ref, res_ref, ow_ref, ob_ref, o_ref, ctx_ref,
                 *, heads, dh, scale):
    inner = heads * dh
    q = q_ref[0]                  # (tq, inner) bf16, heads packed along lanes
    kv = kv_ref[0]                # (T, 2*inner), K | V packed along lanes
    for h in range(heads):        # per-head context written to the scratch slab
        qh = q[:, h * dh:(h + 1) * dh]
        kh = kv[:, h * dh:(h + 1) * dh]
        vh = kv[:, inner + h * dh: inner + (h + 1) * dh]
        s = lax.dot_general(qh, kh, (((1,), (1,)), ((), ())),
                            preferred_element_type=jnp.float32) * scale
        s = s - jnp.max(s, axis=-1, keepdims=True)
        p = jnp.exp(s)
        p = p * pl.reciprocal(jnp.sum(p, axis=-1, keepdims=True), approx=True)
        oh = jnp.dot(p.astype(vh.dtype), vh, preferred_element_type=jnp.float32)
        ctx_ref[:, h * dh:(h + 1) * dh] = oh.astype(ctx_ref.dtype)
    # single K=inner output projection (instead of `heads` K=dh matmuls)
    y = jnp.dot(ctx_ref[...], ow_ref[...], preferred_element_type=jnp.float32)
    y = y + ob_ref[...] + res_ref[0].astype(jnp.float32)   # + residual
    o_ref[0] = y.astype(o_ref.dtype)


def pallas_attention_block(q, kv, residual, ow, ob, *, heads, dh, out_dtype=ACT_DTYPE):
    """Multi-head self-attention + output projection + residual.

    grid = (batch, q-tiles); K/V block stays resident per batch, q/residual/output
    are tiled along tokens so DMA pipelines and (tq, T) scores bound VMEM use."""
    B, T, inner = q.shape
    D = ow.shape[1]
    scale = float(dh) ** -0.5
    tq = T if T <= ATTN_Q_TILE else ATTN_Q_TILE
    return pl.pallas_call(
        functools.partial(_attn_kernel, heads=heads, dh=dh, scale=scale),
        grid=(B, pl.cdiv(T, tq)),
        in_specs=[
            pl.BlockSpec((1, tq, inner), lambda b, t: (b, t, 0)),
            pl.BlockSpec((1, T, 2 * inner), lambda b, t: (b, 0, 0)),   # K/V resident
            pl.BlockSpec((1, tq, D), lambda b, t: (b, t, 0)),
            pl.BlockSpec((inner, D), lambda b, t: (0, 0)),
            pl.BlockSpec((1, D), lambda b, t: (0, 0)),
        ],
        out_specs=pl.BlockSpec((1, tq, D), lambda b, t: (b, t, 0)),
        out_shape=jax.ShapeDtypeStruct((B, T, D), out_dtype),
        scratch_shapes=[pltpu.VMEM((tq, inner), ACT_DTYPE)],
        compiler_params=_cparams(2),
    )(q, kv, residual, ow, ob)


def _ff_kernel(x_ref, g_ref, bt_ref, w1_ref, b1_ref, w2_ref, b2_ref, o_ref, *, act):
    x = x_ref[...].astype(jnp.float32)
    mu = jnp.mean(x, axis=-1, keepdims=True)
    var = jnp.mean((x - mu) ** 2, axis=-1, keepdims=True)
    h = (x - mu) * lax.rsqrt(var + 1e-5) * g_ref[...] + bt_ref[...]
    h1 = jnp.dot(h.astype(w1_ref.dtype), w1_ref[...],
                 preferred_element_type=jnp.float32) + b1_ref[...]
    h1 = _apply_act(h1, act)
    y = jnp.dot(h1.astype(w2_ref.dtype), w2_ref[...],
                preferred_element_type=jnp.float32) + b2_ref[...]
    o_ref[...] = (y + x).astype(o_ref.dtype)   # residual fused in-kernel


def pallas_ff_block(x, gamma, beta, w1, b1, w2, b2, act="gelu", out_dtype=ACT_DTYPE):
    """x + FF2(gelu(FF1(LN(x)))) in one kernel, row-tiled over tokens."""
    M, D = x.shape
    Dh = w1.shape[1]
    tm = M if M <= FF_ROW_TILE else FF_ROW_TILE
    return pl.pallas_call(
        functools.partial(_ff_kernel, act=act),
        grid=(pl.cdiv(M, tm),),
        in_specs=[
            pl.BlockSpec((tm, D), lambda i: (i, 0)),
            pl.BlockSpec((1, D), lambda i: (0, 0)),
            pl.BlockSpec((1, D), lambda i: (0, 0)),
            pl.BlockSpec((D, Dh), lambda i: (0, 0)),
            pl.BlockSpec((1, Dh), lambda i: (0, 0)),
            pl.BlockSpec((Dh, D), lambda i: (0, 0)),
            pl.BlockSpec((1, D), lambda i: (0, 0)),
        ],
        out_specs=pl.BlockSpec((tm, D), lambda i: (i, 0)),
        out_shape=jax.ShapeDtypeStruct((M, D), out_dtype),
        compiler_params=_cparams(1),
    )(x, gamma, beta, w1, b1, w2, b2)


def _decoder_kernel(f_ref, upw_ref, upb_ref, hmw_ref, hmb_ref, tr_ref, pool_ref, *, act):
    # Works on the coarse (npat*npat) grid: both decoder convs are 1x1 and the upsample
    # is nearest-neighbor, so conv(upsample(x)) == upsample(conv(x)) and the full-res
    # softmax-weighted pooling equals the coarse-grid pooling.
    f = f_ref[0]                                                     # (np2, pre) bf16
    u0 = jnp.dot(f, upw_ref[...], preferred_element_type=jnp.float32) + upb_ref[...]
    u0 = _apply_act(u0, act)                                         # (np2, fd) f32
    # FD -> 1 heatmap projection as VPU multiply + lane reduction (no N=1 MXU matmul).
    s = jnp.sum(u0 * hmw_ref[...], axis=-1, keepdims=True) + hmb_ref[...]   # (np2, 1)
    m = jnp.max(s, axis=0, keepdims=True)                            # (1, 1)
    e = jnp.exp(s - m)
    w = e * pl.reciprocal(jnp.sum(e, axis=0, keepdims=True), approx=True)
    pooled = jnp.sum(w * u0, axis=0, keepdims=True)                  # (1, fd)
    tr_ref[0] = s.astype(tr_ref.dtype)
    pool_ref[...] = pooled.astype(pool_ref.dtype)


def pallas_decoder(fmap, up_w, up_b, hm_w, hm_b, act):
    """Fused up-conv + heatmap head + softmax feature pooling, one grid step per view."""
    NV, NP2, PRE = fmap.shape
    FD = up_w.shape[1]
    return pl.pallas_call(
        functools.partial(_decoder_kernel, act=act),
        grid=(NV,),
        in_specs=[
            pl.BlockSpec((1, NP2, PRE), lambda i: (i, 0, 0)),
            pl.BlockSpec((PRE, FD), lambda i: (0, 0)),
            pl.BlockSpec((1, FD), lambda i: (0, 0)),
            pl.BlockSpec((1, FD), lambda i: (0, 0)),
            pl.BlockSpec((1, 1), lambda i: (0, 0)),
        ],
        out_specs=(
            pl.BlockSpec((1, NP2, 1), lambda i: (i, 0, 0)),
            pl.BlockSpec((1, FD), lambda i: (i, 0)),
        ),
        out_shape=(
            jax.ShapeDtypeStruct((NV, NP2, 1), jnp.float32),
            jax.ShapeDtypeStruct((NV, FD), jnp.float32),
        ),
        compiler_params=_cparams(1),
    )(fmap, up_w, up_b, hm_w, hm_b)


# -----------------------------------------------------------------------------
# MVTC_Sam re-implementation
# -----------------------------------------------------------------------------
class MVTCSamPallas:
    """Pallas re-implementation of MVTC_Sam forward (eval mode)."""

    NUM_IMG = 3  # simplified BoxRenderer: 3 orthographic views (xy, xz, yz)

    def __init__(self, depth, img_size, add_proprio, proprio_dim, add_lang,
                 lang_dim, lang_len, img_feat_dim, feat_dim, im_channels,
                 attn_dim, attn_heads, attn_dim_head, activation,
                 weight_tie_layers, attn_dropout, decoder_dropout,
                 img_patch_size, final_dim, self_cross_ver, add_corr,
                 add_pixel_loc, add_depth, pe_fix, action_horizon=None,
                 renderer_device=None, ifSAM=False, lora_finetune=False,
                 ifsep=False, resize_rgb=False, seed=0):
        assert img_size % img_patch_size == 0
        assert self_cross_ver == 0  # TODO(synk): self_cross_ver=1 split-attention schedule not implemented
        assert pe_fix               # TODO(synk): pe_fix=False (pos-enc over lang tokens) not implemented
        # TODO(synk): SAM backbone / LoRA adapters (ifSAM, lora_finetune, ifsep, resize_rgb) not implemented
        # TODO(synk): action_horizon multi-step head not implemented
        self.training = False
        self.depth = depth
        self.img_size = img_size
        self.add_proprio = add_proprio
        self.proprio_dim = proprio_dim
        self.add_lang = add_lang
        self.lang_emb_dim = lang_dim if add_lang else 0
        self.lang_max_seq_len = lang_len if add_lang else 0
        self.img_feat_dim = img_feat_dim
        self.feat_dim = feat_dim
        self.im_channels = im_channels
        self.attn_dim = attn_dim
        self.attn_heads = attn_heads
        self.attn_dim_head = attn_dim_head
        self.activation = activation
        self.weight_tie_layers = weight_tie_layers
        self.img_patch_size = img_patch_size
        self.final_dim = final_dim
        self.add_corr = add_corr
        self.add_pixel_loc = add_pixel_loc
        self.add_depth = add_depth
        self.num_img = self.NUM_IMG
        self.num_pat = img_size // img_patch_size

        # channels of the rendered image fed to the MVT
        self.img_in_ch = ((3 if add_corr else 0) + img_feat_dim
                          + (3 if add_pixel_loc else 0) + (1 if add_depth else 0))
        self.inp_pre_seq = im_channels * 2 if add_proprio else im_channels
        self.inner_dim = attn_heads * attn_dim_head

        # pixel_loc buffer, channels-last (num_img, H, W, 3)
        H = W = img_size
        pix = jnp.zeros((self.num_img, H, W, 3), jnp.float32)
        pix = pix.at[..., 0].set(jnp.linspace(-1.0, 1.0, self.num_img)[:, None, None])
        pix = pix.at[..., 1].set(jnp.linspace(-1.0, 1.0, H)[None, :, None])
        pix = pix.at[..., 2].set(jnp.linspace(-1.0, 1.0, W)[None, None, :])
        self.pixel_loc = pix

        self.params = self._init_params(seed)

    # ------------------------------------------------------------------ params
    def _init_params(self, seed):
        key = jax.random.PRNGKey(seed)
        ctr = [0]

        def nxt():
            ctr[0] += 1
            return jax.random.fold_in(key, ctr[0])

        def wf(shape, scale=0.02):
            return scale * jax.random.normal(nxt(), shape, jnp.float32)

        def w(shape, scale=0.02):
            return wf(shape, scale).astype(PARAM_DTYPE)

        def b(n):
            return jnp.zeros((1, n), jnp.float32)

        p = {}
        im, pre, ad, inner = self.im_channels, self.inp_pre_seq, self.attn_dim, self.inner_dim
        p["inp_w"] = w((self.img_in_ch, im)); p["inp_b"] = b(im)
        # patch conv weight rows ordered (ky, kx, c_im) -> (ky*p + kx)*im + c_im
        p["patch_w"] = w((self.img_patch_size * self.img_patch_size * im, im)); p["patch_b"] = b(im)
        if self.add_proprio:
            p["prop_w"] = w((self.proprio_dim, im)); p["prop_b"] = b(im)
        p["pos_emb"] = wf((1, self.num_img * self.num_pat * self.num_pat, pre))
        if self.add_lang:
            p["lang_w"] = w((self.lang_emb_dim, pre)); p["lang_b"] = b(pre)
        p["bef_w"] = w((pre, ad)); p["bef_b"] = b(ad)

        def make_layer():
            return {
                "ln1_g": jnp.ones((1, ad), jnp.float32), "ln1_b": b(ad),
                # q and (k|v) projections split so the attention kernel can block
                # q over tokens while keeping K/V resident per batch.
                "q_w": w((ad, inner)), "q_b": b(inner),
                "kv_w": w((ad, 2 * inner)), "kv_b": b(2 * inner),
                "o_w": w((inner, ad)), "o_b": b(ad),
                "ln2_g": jnp.ones((1, ad), jnp.float32), "ln2_b": b(ad),
                "ff1_w": w((ad, 4 * ad)), "ff1_b": b(4 * ad),
                "ff2_w": w((4 * ad, ad)), "ff2_b": b(ad),
            }

        if self.weight_tie_layers:
            shared = make_layer()
            p["layers"] = [shared for _ in range(self.depth)]
        else:
            p["layers"] = [make_layer() for _ in range(self.depth)]

        p["aft_w"] = w((ad, pre)); p["aft_b"] = b(pre)
        # decoder (TODO(synk): ConvexUpSample replaced by nearest-upsample + 1x1 convs)
        p["up_w"] = w((pre, self.final_dim)); p["up_b"] = b(self.final_dim)
        p["hm_w"] = wf((1, self.final_dim))          # used as a VPU row, f32
        p["hm_b"] = b(1)
        p["f1_w"] = w((self.num_img * self.final_dim, self.final_dim)); p["f1_b"] = b(self.final_dim)
        p["f2_w"] = w((self.final_dim, self.feat_dim)); p["f2_b"] = b(self.feat_dim)
        return p

    # ---------------------------------------------------------------- renderer
    def render(self, pc, img_feat, img_aug):
        """Orthographic splat of the point cloud onto num_img views.
        Returns img in channels-last layout (bs, num_img, H, W, C)."""
        # TODO(synk): BoxRenderer uses a z-buffered point rasterizer; this is a
        # nearest-pixel scatter (last point wins) implemented in plain JAX glue.
        assert img_aug == 0  # TODO(synk): img_aug gaussian-uniform noise not implemented
        H = W = self.img_size
        axes = [(0, 1), (0, 2), (1, 2)]
        imgs = []
        for _pc, _feat in zip(pc, img_feat):
            vals = jnp.concatenate([_pc, _feat], axis=-1) if self.add_corr else _feat
            C = vals.shape[-1]
            views = []
            for (ax, ay) in axes:
                ix = jnp.clip(jnp.round((_pc[:, ax] + 1.0) * 0.5 * (W - 1)).astype(jnp.int32), 0, W - 1)
                iy = jnp.clip(jnp.round((_pc[:, ay] + 1.0) * 0.5 * (H - 1)).astype(jnp.int32), 0, H - 1)
                im = jnp.zeros((H, W, C), jnp.float32).at[iy, ix].set(vals)
                views.append(im)
            imgs.append(jnp.stack(views, 0))
        img = jnp.stack(imgs, 0)                       # (bs, V, H, W, C) channels-last
        if self.add_pixel_loc:
            bs = img.shape[0]
            pix = jnp.broadcast_to(self.pixel_loc[None], (bs,) + self.pixel_loc.shape)
            img = jnp.concatenate([img, pix], axis=-1)
        return img

    # -------------------------------------------------------------- verify_inp
    def verify_inp(self, pc, img_feat, proprio, lang_emb, img_aug):
        if not self.training:
            assert img_aug == 0
        bs = len(pc)
        assert bs == len(img_feat)
        for _pc, _f in zip(pc, img_feat):
            assert _pc.shape[1] == 3
            assert _f.shape[0] == _pc.shape[0]
            assert _f.shape[1] == self.img_feat_dim
        if self.add_proprio:
            assert proprio.shape == (bs, self.proprio_dim)
        if self.add_lang:
            assert lang_emb.shape == (bs, self.lang_max_seq_len, self.lang_emb_dim)

    # ------------------------------------------------------------------ forward
    def forward(self, pc, img_feat, proprio=None, lang_emb=None, img_aug=0, **kwargs):
        self.verify_inp(pc, img_feat, proprio, lang_emb, img_aug)
        img = self.render(pc, img_feat, img_aug)       # (bs, V, H, W, C)
        return self._mvt_forward(img, proprio, lang_emb)

    def _mvt_forward(self, img, proprio, lang_emb):
        P = self.params
        act = self.activation
        bs, V, H, W, C = img.shape
        p = self.img_patch_size
        npat = self.num_pat
        im = self.im_channels
        pre = self.inp_pre_seq
        ad = self.attn_dim
        heads, dh, inner = self.attn_heads, self.attn_dim_head, self.inner_dim

        # ---- fused input_preprocess + patchify ----
        # Position-major im2col of the RAW (small-C) image, then ONE kernel does the
        # 1x1 conv + act + patch matmul per kernel position (no wide intermediate).
        x = img.astype(ACT_DTYPE).reshape(bs * V, npat, p, npat, p, C)
        x = jnp.transpose(x, (2, 4, 0, 1, 3, 5)).reshape(p * p, bs * V * npat * npat, C)
        ins = pallas_preproc_patchify(x, P["inp_w"], P["inp_b"],
                                      P["patch_w"], P["patch_b"], act)
        ins = ins.reshape(bs, V * npat * npat, im)

        # ---- proprio token broadcast + channel concat ----
        if self.add_proprio:
            pp = pallas_linear(proprio.astype(ACT_DTYPE), P["prop_w"], P["prop_b"], act=act)
            pp = jnp.broadcast_to(pp[:, None, :], (bs, V * npat * npat, im))
            ins = jnp.concatenate([ins, pp], axis=-1)                 # (bs, T_img, pre)

        # ---- positional encoding (pe_fix=True: image tokens only) ----
        # TODO(synk): token assembly could be folded into the fc_bef_attn kernel.
        ins = (ins.astype(jnp.float32) + P["pos_emb"]).astype(ACT_DTYPE)

        # ---- language tokens ----
        if self.add_lang:
            L = self.lang_max_seq_len
            l = pallas_linear(lang_emb.reshape(bs * L, self.lang_emb_dim).astype(ACT_DTYPE),
                              P["lang_w"], P["lang_b"], act=act)
            l = l.reshape(bs, L, pre)
            xtok = jnp.concatenate([l, ins], axis=1)
        else:
            xtok = ins
        T = xtok.shape[1]

        # ---- fc_bef_attn ----
        xf = pallas_linear(xtok.reshape(bs * T, pre), P["bef_w"], P["bef_b"]).reshape(bs, T, ad)

        # ---- transformer layers (self_cross_ver == 0: full self-attention) ----
        # 3 fused pallas_calls per layer:
        #   (LN1 + q/kv proj), (q-tiled attn + out-proj + residual), (LN2 + FF + residual)
        for lp in P["layers"]:
            flat = xf.reshape(bs * T, ad)
            qp, kvp = pallas_ln_qkv(flat, lp["ln1_g"], lp["ln1_b"],
                                    lp["q_w"], lp["q_b"], lp["kv_w"], lp["kv_b"])
            xf = pallas_attention_block(qp.reshape(bs, T, inner),
                                        kvp.reshape(bs, T, 2 * inner),
                                        xf, lp["o_w"], lp["o_b"], heads=heads, dh=dh)
            xf = pallas_ff_block(xf.reshape(bs * T, ad), lp["ln2_g"], lp["ln2_b"],
                                 lp["ff1_w"], lp["ff1_b"], lp["ff2_w"], lp["ff2_b"],
                                 act="gelu").reshape(bs, T, ad)
        # NOTE: attn_dropout / decoder_dropout are eval-mode no-ops.

        # ---- fc_aft_attn, drop lang tokens ----
        xa = pallas_linear(xf.reshape(bs * T, ad), P["aft_w"], P["aft_b"]).reshape(bs, T, pre)
        if self.add_lang:
            xa = xa[:, self.lang_max_seq_len:]

        # ---- decoder: fused up-conv + heatmap + softmax pooling at coarse grid ----
        fmap = xa.reshape(bs * V, npat * npat, pre)
        trans_c, pooled = pallas_decoder(fmap, P["up_w"], P["up_b"], P["hm_w"], P["hm_b"], act)

        # nearest-upsample of the coarse heatmap == upsample-then-1x1-conv heatmap
        trans = trans_c.reshape(bs, V, npat, npat)
        trans = jnp.repeat(jnp.repeat(trans, p, axis=2), p, axis=3)   # (bs, V, H, W) f32

        # ---- feature MLP on softmax-pooled per-view features ----
        pooled = pooled.reshape(bs, V * self.final_dim)
        f = pallas_linear(pooled.astype(ACT_DTYPE), P["f1_w"], P["f1_b"], act="relu")
        feat = pallas_linear(f, P["f2_w"], P["f2_b"], out_dtype=jnp.float32)   # (bs, feat_dim)

        return {"trans": trans, "feat": feat}


# -----------------------------------------------------------------------------
# main
# -----------------------------------------------------------------------------
if __name__ == "__main__":
    key = jax.random.PRNGKey(0)
    bs = 2
    num_points = 64

    model = MVTCSamPallas(
        depth=2, img_size=16, add_proprio=True, proprio_dim=4, add_lang=True,
        lang_dim=32, lang_len=8, img_feat_dim=3, feat_dim=8, im_channels=16,
        attn_dim=32, attn_heads=2, attn_dim_head=16, activation="lrelu",
        weight_tie_layers=False, attn_dropout=0.0, decoder_dropout=0.0,
        img_patch_size=8, final_dim=16, self_cross_ver=0, add_corr=True,
        add_pixel_loc=True, add_depth=False, pe_fix=True, seed=0,
    )

    k1, k2, k3, k4 = jax.random.split(key, 4)
    pc = [jax.random.uniform(jax.random.fold_in(k1, i), (num_points, 3),
                             minval=-1.0, maxval=1.0) for i in range(bs)]
    img_feat = [jax.random.uniform(jax.random.fold_in(k2, i), (num_points, 3),
                                   minval=-1.0, maxval=1.0) for i in range(bs)]
    proprio = jax.random.normal(k3, (bs, 4), jnp.float32)
    lang_emb = jax.random.normal(k4, (bs, 8, 32), jnp.float32)

    out = model.forward(pc, img_feat, proprio=proprio, lang_emb=lang_emb, img_aug=0)
    jax.block_until_ready(out["trans"])
    jax.block_until_ready(out["feat"])
    assert out["trans"].shape == (bs, model.num_img, 16, 16)
    assert out["feat"].shape == (bs, 8)
    assert out["trans"].dtype == jnp.float32 and out["feat"].dtype == jnp.float32
    print("KERNEL_OK")
</pallas_src>

<mosaic_0001>
module attributes {stable_mosaic.version = 11 : i64} {
  func.func @_preproc_patchify_kernel(%arg0: i32, %arg1: memref<64x24x9xbf16, #tpu.memory_space<vmem>>, %arg2: memref<9x16xbf16, #tpu.memory_space<vmem>>, %arg3: memref<1x16xf32, #tpu.memory_space<vmem>>, %arg4: memref<1024x16xbf16, #tpu.memory_space<vmem>>, %arg5: memref<1x16xf32, #tpu.memory_space<vmem>>, %arg6: memref<24x16xbf16, #tpu.memory_space<vmem>>, %arg7: memref<24x16xf32, #tpu.memory_space<vmem>>) attributes {dimension_semantics = [#tpu.dimension_semantics<parallel>], iteration_bounds = array<i64: 1>, scalar_prefetch = 0 : i64, scratch_operands = 1 : i64, tpu.core_type = #tpu.core_type<tc>, window_params = [{transform_indices = @transform_0, window_bounds = array<i64: 64, 24, 9>}, {pipeline_mode = #tpu.pipeline_mode<synchronous>, transform_indices = @transform_1, window_bounds = array<i64: 9, 16>}, {pipeline_mode = #tpu.pipeline_mode<synchronous>, transform_indices = @transform_2, window_bounds = array<i64: 1, 16>}, {pipeline_mode = #tpu.pipeline_mode<synchronous>, transform_indices = @transform_3, window_bounds = array<i64: 1024, 16>}, {pipeline_mode = #tpu.pipeline_mode<synchronous>, transform_indices = @transform_4, window_bounds = array<i64: 1, 16>}, {transform_indices = @transform_5, window_bounds = array<i64: 24, 16>}]} {
    %cst = arith.constant 0.000000e+00 : f32
    %0 = vector.broadcast %cst : f32 to vector<24x16xf32>
    %c0 = arith.constant 0 : index
    %c0_0 = arith.constant 0 : index
    %1 = vector.load %arg7[%c0, %c0_0] : memref<24x16xf32, #tpu.memory_space<vmem>>, vector<24x16xf32>
    tpu.vector_store %arg7[%c0, %c0_0], %0 {strides = array<i32>} : memref<24x16xf32, #tpu.memory_space<vmem>>, vector<24x16xf32>,
    %c0_i32 = arith.constant 0 : i32
    %c64_i32 = arith.constant 64 : i32
    %2 = arith.addi %c0_i32, %c64_i32 : i32
    %c1_i32 = arith.constant 1 : i32
    scf.for %arg8 = %c0_i32 to %2 step %c1_i32  : i32 {
      %14 = arith.index_cast %arg8 : i32 to index
      %c0_10 = arith.constant 0 : index
      %c0_11 = arith.constant 0 : index
      %15 = vector.load %arg1[%14, %c0_10, %c0_11] : memref<64x24x9xbf16, #tpu.memory_space<vmem>>, vector<1x24x9xbf16>
      %16 = vector.shape_cast %15 : vector<1x24x9xbf16> to vector<24x9xbf16>
      %c0_12 = arith.constant 0 : index
      %c0_13 = arith.constant 0 : index
      %17 = vector.load %arg2[%c0_12, %c0_13] : memref<9x16xbf16, #tpu.memory_space<vmem>>, vector<9x16xbf16>
      %cst_14 = arith.constant dense<0.000000e+00> : vector<24x16xf32>
      %18 = tpu.matmul %16, %17, %cst_14 {dimension_numbers = #tpu.dot_dimension_numbers<[1], [0], [0], [1], [0, 0, 1, 1], [], []>} : vector<24x9xbf16>, vector<9x16xbf16>, vector<24x16xf32> -> vector<24x16xf32>
      %c0_15 = arith.constant 0 : index
      %c0_16 = arith.constant 0 : index
      %19 = vector.load %arg3[%c0_15, %c0_16] : memref<1x16xf32, #tpu.memory_space<vmem>>, vector<1x16xf32>
      %20 = vector.broadcast %19 : vector<1x16xf32> to vector<24x16xf32>
      %21 = arith.addf %18, %20 : vector<24x16xf32>
      %cst_17 = arith.constant 0.000000e+00 : f32
      %22 = vector.broadcast %cst_17 : f32 to vector<24x16xf32>
      %23 = arith.cmpf oge, %21, %22 : vector<24x16xf32>
      %cst_18 = arith.constant 2.000000e-02 : f32
      %24 = vector.broadcast %cst_18 : f32 to vector<24x16xf32>
      %25 = arith.mulf %24, %21 : vector<24x16xf32>
      %26 = arith.select %23, %21, %25 : vector<24x16xi1>, vector<24x16xf32>
      %c16_i32 = arith.constant 16 : i32
      %27 = arith.muli %arg8, %c16_i32 : i32
      %28 = tpu.assume_multiple %27, 16 : i32
      %29 = arith.index_cast %28 : i32 to index
      %c0_19 = arith.constant 0 : index
      %30 = vector.load %arg4[%29, %c0_19] : memref<1024x16xbf16, #tpu.memory_space<vmem>>, vector<16x16xbf16>
      %c0_20 = arith.constant 0 : index
      %c0_21 = arith.constant 0 : index
      %31 = vector.load %arg7[%c0_20, %c0_21] : memref<24x16xf32, #tpu.memory_space<vmem>>, vector<24x16xf32>
      %32 = arith.truncf %26 : vector<24x16xf32> to vector<24x16xbf16>
      %cst_22 = arith.constant dense<0.000000e+00> : vector<24x16xf32>
      %33 = tpu.matmul %32, %30, %cst_22 {dimension_numbers = #tpu.dot_dimension_numbers<[1], [0], [0], [1], [0, 0, 1, 1], [], []>} : vector<24x16xbf16>, vector<16x16xbf16>, vector<24x16xf32> -> vector<24x16xf32>
      %34 = arith.addf %31, %33 : vector<24x16xf32>
      %c0_23 = arith.constant 0 : index
      %c0_24 = arith.constant 0 : index
      %35 = vector.load %arg7[%c0_23, %c0_24] : memref<24x16xf32, #tpu.memory_space<vmem>>, vector<24x16xf32>
      tpu.vector_store %arg7[%c0_23, %c0_24], %34 {strides = array<i32>} : memref<24x16xf32, #tpu.memory_space<vmem>>, vector<24x16xf32>,
    }
    %c64_i32_1 = arith.constant 64 : i32
    %c0_2 = arith.constant 0 : index
    %c0_3 = arith.constant 0 : index
    %3 = vector.load %arg7[%c0_2, %c0_3] : memref<24x16xf32, #tpu.memory_space<vmem>>, vector<24x16xf32>
    %c0_4 = arith.constant 0 : index
    %c0_5 = arith.constant 0 : index
    %4 = vector.load %arg5[%c0_4, %c0_5] : memref<1x16xf32, #tpu.memory_space<vmem>>, vector<1x16xf32>
    %5 = vector.broadcast %4 : vector<1x16xf32> to vector<24x16xf32>
    %6 = arith.addf %3, %5 : vector<24x16xf32>
    %cst_6 = arith.constant 0.000000e+00 : f32
    %7 = vector.broadcast %cst_6 : f32 to vector<24x16xf32>
    %8 = arith.cmpf oge, %6, %7 : vector<24x16xf32>
    %cst_7 = arith.constant 2.000000e-02 : f32
    %9 = vector.broadcast %cst_7 : f32 to vector<24x16xf32>
    %10 = arith.mulf %9, %6 : vector<24x16xf32>
    %11 = arith.select %8, %6, %10 : vector<24x16xi1>, vector<24x16xf32>
    %12 = arith.truncf %11 : vector<24x16xf32> to vector<24x16xbf16>
    %c0_8 = arith.constant 0 : index
    %c0_9 = arith.constant 0 : index
    %13 = vector.load %arg6[%c0_8, %c0_9] : memref<24x16xbf16, #tpu.memory_space<vmem>>, vector<24x16xbf16>
    tpu.vector_store %arg6[%c0_8, %c0_9], %12 {strides = array<i32>} : memref<24x16xbf16, #tpu.memory_space<vmem>>, vector<24x16xbf16>,
    return
  }
  func.func @transform_0(%arg0: i32) -> (i32, i32, i32) {
    %c0_i32 = arith.constant 0 : i32
    %c0_i32_0 = arith.constant 0 : i32
    %c0_i32_1 = arith.constant 0 : i32
    return %c0_i32, %arg0, %c0_i32_0 : i32, i32, i32
  }
  func.func @transform_1(%arg0: i32) -> (i32, i32) {
    %c0_i32 = arith.constant 0 : i32
    %c0_i32_0 = arith.constant 0 : i32
    %c0_i32_1 = arith.constant 0 : i32
    return %c0_i32, %c0_i32_0 : i32, i32
  }
  func.func @transform_2(%arg0: i32) -> (i32, i32) {
    %c0_i32 = arith.constant 0 : i32
    %c0_i32_0 = arith.constant 0 : i32
    %c0_i32_1 = arith.constant 0 : i32
    return %c0_i32, %c0_i32_0 : i32, i32
  }
  func.func @transform_3(%arg0: i32) -> (i32, i32) {
    %c0_i32 = arith.constant 0 : i32
    %c0_i32_0 = arith.constant 0 : i32
    %c0_i32_1 = arith.constant 0 : i32
    return %c0_i32, %c0_i32_0 : i32, i32
  }
  func.func @transform_4(%arg0: i32) -> (i32, i32) {
    %c0_i32 = arith.constant 0 : i32
    %c0_i32_0 = arith.constant 0 : i32
    %c0_i32_1 = arith.constant 0 : i32
    return %c0_i32, %c0_i32_0 : i32, i32
  }
  func.func @transform_5(%arg0: i32) -> (i32, i32) {
    %c0_i32 = arith.constant 0 : i32
    %c0_i32_0 = arith.constant 0 : i32
    return %arg0, %c0_i32 : i32, i32
  }
}

</mosaic_0001>

<bundles_post_ra>
// kernel: tpu_custom_call.1
= control target key start
LH: loop header
LB: loop body
LE: loop exit
PB: predicated region body
PF: predicated region fallthrough
CT: control target
= control target key end

     0   :  { %vm21_vm0 = vcmask 130048   ;;  %v320_v0 = vmov 0.0   ;;  %s355_s18 = smov 0   ;;  %s394_s0 = inlined_call_operand.vmem [shape: bf16[64,24,9], index: 0, kind: input, shape index: {}]   ;;  %s395_s1 = inlined_call_operand.vmem [shape: bf16[9,16], index: 1, kind: input, shape index: {}]   ;;  %s396_s2 = inlined_call_operand.vmem [shape: f32[1,16], index: 2, kind: input, shape index: {}]   ;;  %s397_s3 = inlined_call_operand.vmem [shape: bf16[1024,16], index: 3, kind: input, shape index: {}]   ;;  %s398_s4 = inlined_call_operand.vmem [shape: f32[1,16], index: 4, kind: input, shape index: {}]   ;;  %s399_s5 = inlined_call_operand.vmem [shape: bf16[24,16], index: 5, kind: output, shape index: {}]  }
   0x1   :  { %22 = vst.msk [vmem:[#allocation2] sm:$0xff] %vm21_vm0, %v320_v0  ;;  %23 = vst.msk [vmem:[#allocation2 + $0x8] sm:$0xff] %vm21_vm0, %v320_v0 }
   0x2   :  { %24 = vst.msk [vmem:[#allocation2 + $0x10] sm:$0xff] %vm21_vm0, %v320_v0 }
   0x3 LB: > { %v308_v1 = vld [vmem:[%s395_s1] sm:$0x1f]   ;;  %vm66_vm1 = vcmask 1043456   ;;  %vm67_vm2 = vcmask 1044480   ;;  %v321_v2 = vmov 65535   ;;  %s276_s21 = smul.u32 12, %s318_s18  ;;  %s318_s18 = sphi %s355_s18, %s30_s18  }
   0x4   : > { %v68_v3 = vsel %vm66_vm1, 4294967295, %v321_v2  ;;  %vm59_vm3 = vcmask 72704   ;;  %s267_s25 = sshll.u32 %s318_s18, 4  ;;  %v261_v9 = vld [vmem:[%s396_s2] ss:$0 sm:$0xff]  ;;  %s30_s18 = sadd.s32 1, %s318_s18  }
   0x5   : > { %v69_v4 = vsel %vm67_vm2, %v68_v3, 0  ;;  %s33_s24 = scalar_lea.vmem %s394_s0, %s276_s21  ;;  %s131_s26 = sshra.s32 %s267_s25, 3 }
   0x6   : > { %v71_v5 = vand.u32 %v308_v1, %v69_v4  ;;  %v309_v6 = vld [vmem:[%s33_s24] sm:$0xff]   ;;  %v310_v7 = vld [vmem:[%s33_s24 + $0x8] ss:$0 sps:$4 sm:$0xff]   ;;  %s268_s27 = sshll.u32 %s131_s26, 2  ;;  %p27_p0 = scmp.ge.s32.totalorder %s30_s18, 64  }
   0x7   : > { %288 = vmatprep.mubr.msk.bf16.mxu0 %vm59_vm3, %v309_v6  ;;  %s134_s30 = scalar_lea.vmem %s397_s3, %s268_s27  ;;  %v272_v36 = vld [vmem:[%s398_s4] ss:$0 sm:$0xff] (%p27_p0)  ;;  %vm243_vm10 = vcmask (%p27_p0), 125952  }
   0x8   : > { %286 = vmatprep.subr.bf16.mxu0 %v71_v5  ;;  %v311_v8 = vld [vmem:[%s134_s30] sm:$0xff]   ;;  %v138_v32 = vld [vmem:[#allocation2 + $0x8] sm:$0xff] }
   0x9   : > { %287 = vmatpush3.bf16.msra.mxu0 %v71_v5  ;;  %292 = vmatprep.subr.bf16.mxu1 %v311_v8  ;;  %v139_v25 = vld [vmem:[#allocation2 + $0x10] sm:$0xff]  ;;  %v137_v27 = vld [vmem:[#allocation2] sm:$0xff] }
   0xa   : > { %293 = vmatpush3.bf16.msra.mxu1 %v311_v8 }
   0xc   : > { %289 = vmatmul.mubr.msk.bf16.vlgmr.msra.gmra.mxu0 %vm59_vm3, %v310_v7 }
  0xcc   : > { %v290_v10 = vpop.f32.mrf.mxu0 }
  0xcd   : > { %v116_v11 = vadd.f32 %v290_v10, %v261_v9 }
  0xce   : > { %v107_v12 = vpop.f32.mrf.mxu0 }
  0xcf   : > { %v108_v13 = vadd.f32 %v261_v9, %v107_v12  ;;  %v126_v15 = vmul.f32 0.02, %v116_v11  ;;  %vm123_vm4 = vcmp.ge.f32.partialorder %v116_v11, 0.0 }
  0xd0   : > { %v291_v14 = vpop.f32.mrf.mxu0 }
  0xd1   : > { %v124_v17 = vmul.f32 0.02, %v108_v13  ;;  %vm121_vm5 = vcmp.ge.f32.partialorder %v108_v13, 0.0  ;;  %v129_v20 = vsel %vm123_vm4, %v116_v11, %v126_v15 }
  0xd2   : > { %v110_v16 = vpop.f32.mrf.mxu0  ;;  %v141_v24 = vpack.c.bf16 %v129_v20, %v129_v20 }
  0xd3   : > { %v111_v18 = vadd.f32 %v261_v9, %v110_v16  ;;  %v127_v21 = vsel %vm121_vm5, %v108_v13, %v124_v17 }
  0xd5   : > { %v125_v19 = vmul.f32 0.02, %v111_v18  ;;  %vm122_vm6 = vcmp.ge.f32.partialorder %v111_v18, 0.0 }
  0xd7   : > { %v128_v22 = vsel %vm122_vm6, %v111_v18, %v125_v19 }
  0xd8   : > { %v140_v23 = vpack.c.bf16 %v128_v22, %v127_v21 }
  0xda   : > { %294 = vmatprep.mubr.msk.bf16.mxu1 %vm21_vm0, %v140_v23 }
  0xdb   : > { %295 = vmatmul.mubr.msk.bf16.vlgmr.msra.gmra.mxu1 %vm21_vm0, %v141_v24 }
 0x19b   : > { %v296_v26 = vpop.f32.mrf.mxu1 }
 0x19c   : > { %v204_v28 = vadd.f32 %v296_v26, %v139_v25 }
 0x19d   : > { %v188_v29 = vpop.f32.mrf.mxu1 }
 0x19e   : > { %207 = vst.msk [vmem:[#allocation2 + $0x10] sm:$0xff] %vm21_vm0, %v204_v28  ;;  %v202_v30 = vadd.f32 %v188_v29, %v137_v27 }
 0x19f   : > { %v297_v31 = vpop.f32.mrf.mxu1 }
 0x1a0   : > { %205 = vst.msk [vmem:[#allocation2] sm:$0xff] %vm21_vm0, %v202_v30  ;;  %29 = sbr.rel (!%p27_p0) target bundleno = 3 (0x3), region = 49 }
 0x1a1   : > { %v191_v33 = vpop.f32.mrf.mxu1 }
 0x1a2   : > { %v203_v34 = vadd.f32 %v191_v33, %v138_v32 }
 0x1a4   : > { %206 = vst.msk [vmem:[#allocation2 + $0x8] sm:$0xff] %vm21_vm0, %v203_v34 }
 0x1a5   :  { %v210_v40 = vld [vmem:[#allocation2 + $0x10] sm:$0xff] }
 0x1a6   :  { %v220_v41 = vadd.f32 %v272_v36, %v210_v40 }
 0x1a7   :  { %v208_v35 = vld [vmem:[#allocation2] sm:$0xff] }
 0x1a8   :  { %v218_v38 = vadd.f32 %v272_v36, %v208_v35  ;;  %vm223_vm9 = vcmp.ge.f32.partialorder %v220_v41, 0.0  ;;  %v226_v44 = vmul.f32 0.02, %v220_v41 }
 0x1aa   :  { %vm221_vm7 = vcmp.ge.f32.partialorder %v218_v38, 0.0  ;;  %v224_v42 = vmul.f32 0.02, %v218_v38  ;;  %v229_v49 = vsel %vm223_vm9, %v220_v41, %v226_v44 }
 0x1ab   :  { %v209_v37 = vld [vmem:[#allocation2 + $0x8] sm:$0xff]  ;;  %v279_v50 = vpack.c.bf16 %v229_v49, %v229_v49 }
 0x1ac   :  { %v219_v39 = vadd.f32 %v272_v36, %v209_v37  ;;  %v227_v45 = vsel %vm221_vm7, %v218_v38, %v224_v42 }
 0x1ad   :  { %v277_v47 = vpack.c.bf16 %v227_v45, %v227_v45  ;;  %246 = vst.msk [vmem:[%s399_s5 + $0x8] sm:$0xf] %vm243_vm10, %v279_v50 }
 0x1ae   :  { %vm222_vm8 = vcmp.ge.f32.partialorder %v219_v39, 0.0  ;;  %v225_v43 = vmul.f32 0.02, %v219_v39 }
 0x1af   :  { %244 = vst.msk [vmem:[%s399_s5] sm:$0xf] %vm243_vm10, %v277_v47 }
 0x1b0   :  { %v228_v46 = vsel %vm222_vm8, %v219_v39, %v225_v43 }
 0x1b1   :  { %v278_v48 = vpack.c.bf16 %v228_v46, %v228_v46 }
 0x1b3   :  { %245 = vst.msk [vmem:[%s399_s5 + $0x4] sm:$0xf] %vm243_vm10, %v278_v48 }

</bundles_post_ra>
